<compile_context>
chip_gen: v6e
topology: v6e:2x2x1
jax: 0.10.0
libtpu: 0.0.40
codegen_flags: <defaults>
</compile_context>

<pallas_src>
import functools

import jax
import jax.numpy as jnp
from jax.experimental import pallas as pl
from jax.experimental.pallas import tpu as pltpu


def _round_up(n, m):
    return ((n + m - 1) // m) * m


def _cdiv(a, b):
    return -(-a // b)


def _dqn_kernel(x_ref, w1_ref, b1_ref, w2_ref, b2_ref, w3_ref, b3_ref, o_ref):
    # x: (TB, F) f32 streamed; weights bf16 (VMEM-resident); biases f32.
    # Cast x to bf16 inside the kernel to avoid an extra XLA pass over x.
    x = x_ref[...].astype(jnp.bfloat16)
    h1 = jnp.dot(x, w1_ref[...], preferred_element_type=jnp.float32) + b1_ref[...]
    h1 = jnp.maximum(h1, 0.0).astype(jnp.bfloat16)           # relu in f32, bf16 feed
    h2 = jnp.dot(h1, w2_ref[...], preferred_element_type=jnp.float32) + b2_ref[...]
    h2 = jnp.maximum(h2, 0.0).astype(jnp.bfloat16)
    q = jnp.dot(h2, w3_ref[...], preferred_element_type=jnp.float32) + b3_ref[...]
    o_ref[...] = q.astype(o_ref.dtype)                        # (TB, 32) f32 store (unpadded)


def prepare_dqn_params(w1, b1, w2, b2, w3, b3):
    """One-time conversion of raw f32 params into kernel layout.

    Call once at init (NOT per forward) so the bf16 casts / reshapes are not
    re-executed on every acting-loop step.
    Weights are (in_features, out_features); biases become f32 (1, out_features).
    """
    def _w(w):
        return jnp.asarray(w, jnp.bfloat16)

    def _b(b):
        return jnp.asarray(b, jnp.float32).reshape(1, -1)

    return (_w(w1), _b(b1), _w(w2), _b(b2), _w(w3), _b(b3))


def _choose_tile(B, tb_max):
    """Pick (tb_eff, B_pad, steps): bounded padding waste, and for multi-step
    grids keep >=4 steps so megacore (v7x) can shard the batch axis."""
    b8 = _round_up(max(B, 1), 8)
    steps = _cdiv(b8, tb_max)
    if steps > 1:
        steps = max(steps, 4)
    tb_eff = _round_up(_cdiv(b8, steps), 8)
    B_pad = _round_up(B, tb_eff)
    return tb_eff, B_pad, B_pad // tb_eff


@functools.partial(jax.jit, static_argnames=("tb_max",))
def dqn_forward(x, params, *, tb_max=2048):
    """Forward pass. `params` must come from prepare_dqn_params()."""
    w1, b1, w2, b2, w3, b3 = params

    # t.flatten(start_dim=1) — glue reshape stays in plain JAX.
    xf = x.reshape(x.shape[0], -1).astype(jnp.float32)
    B, F = xf.shape
    H1 = w1.shape[1]   # 128
    H2 = w2.shape[1]   # 128
    O = w3.shape[1]    # 32

    tb_eff, B_pad, steps = _choose_tile(B, tb_max)
    if B_pad != B:
        xf = jnp.pad(xf, ((0, B_pad - B), (0, 0)))

    # VMEM estimate: double-buffered x/out streams + resident weights/biases.
    vmem_est = 2 * (tb_eff * F * 4 + tb_eff * O * 4)
    vmem_est += (F * H1 + H1 * H2 + H2 * O) * 2 + (H1 + H2 + O) * 4
    vmem_limit = None
    if vmem_est > 12 * 1024 * 1024:  # only override v5e's 16 MiB scoped default when needed
        vmem_limit = min(int(vmem_est * 3 // 2), 48 * 1024 * 1024)

    out = pl.pallas_call(
        _dqn_kernel,
        out_shape=jax.ShapeDtypeStruct((B_pad, O), jnp.float32),
        grid=(steps,),
        in_specs=[
            pl.BlockSpec((tb_eff, F), lambda i: (i, 0)),    # streamed activations
            pl.BlockSpec((F, H1), lambda i: (0, 0)),        # weights/biases: VMEM-resident
            pl.BlockSpec((1, H1), lambda i: (0, 0)),
            pl.BlockSpec((H1, H2), lambda i: (0, 0)),
            pl.BlockSpec((1, H2), lambda i: (0, 0)),
            pl.BlockSpec((H2, O), lambda i: (0, 0)),
            pl.BlockSpec((1, O), lambda i: (0, 0)),
        ],
        out_specs=pl.BlockSpec((tb_eff, O), lambda i: (i, 0)),
        compiler_params=pltpu.CompilerParams(
            dimension_semantics=("parallel",),              # megacore on v7x, no-op on v5e/v6e
            vmem_limit_bytes=vmem_limit,
        ),
    )(xf, w1, b1, w2, b2, w3, b3)

    if B_pad != B:
        out = out[:B]                                        # row slice only, no lane slice
    return out


def init_dqn_params(key, num_args_per_state):
    """Deterministic PyTorch-style Linear init: U(-1/sqrt(fan_in), 1/sqrt(fan_in)).

    Weights are returned already transposed to (in_features, out_features).
    """
    dims = [(num_args_per_state, 128), (128, 128), (128, 32)]
    params = []
    for (fan_in, fan_out) in dims:
        key, kw, kb = jax.random.split(key, 3)
        bound = 1.0 / jnp.sqrt(jnp.float32(fan_in))
        w = jax.random.uniform(kw, (fan_in, fan_out), jnp.float32, -bound, bound)
        b = jax.random.uniform(kb, (1, fan_out), jnp.float32, -bound, bound)
        params += [w, b]
    return params


def reference_forward_f32(x, w1, b1, w2, b2, w3, b3):
    xf = x.reshape(x.shape[0], -1).astype(jnp.float32)
    h1 = jax.nn.relu(xf @ w1 + b1)
    h2 = jax.nn.relu(h1 @ w2 + b2)
    return h2 @ w3 + b3


def reference_forward_bf16(x, w1, b1, w2, b2, w3, b3):
    # Same precision recipe as the kernel: bf16 operands, f32 accumulation,
    # bias/relu in f32, bf16 re-cast between layers.
    xf = x.reshape(x.shape[0], -1).astype(jnp.bfloat16)
    h1 = jnp.dot(xf, w1.astype(jnp.bfloat16), preferred_element_type=jnp.float32) + b1
    h1 = jnp.maximum(h1, 0.0).astype(jnp.bfloat16)
    h2 = jnp.dot(h1, w2.astype(jnp.bfloat16), preferred_element_type=jnp.float32) + b2
    h2 = jnp.maximum(h2, 0.0).astype(jnp.bfloat16)
    return jnp.dot(h2, w3.astype(jnp.bfloat16), preferred_element_type=jnp.float32) + b3


if __name__ == "__main__":
    NUMBER_OF_ARGUMENTS_PER_STATE = 4
    B = 2

    key = jax.random.PRNGKey(0)
    key, kx = jax.random.split(key)
    # Example state batch: (B, NUMBER_OF_ARGUMENTS_PER_STATE); flatten(start_dim=1) is identity here.
    x = jax.random.normal(kx, (B, NUMBER_OF_ARGUMENTS_PER_STATE), jnp.float32)

    w1, b1, w2, b2, w3, b3 = init_dqn_params(key, NUMBER_OF_ARGUMENTS_PER_STATE)
    # One-time param prep (hoisted out of the per-call forward).
    params = prepare_dqn_params(w1, b1, w2, b2, w3, b3)
    params = jax.block_until_ready(params)

    # Small-batch path (single grid step, tile clamped to 8 rows).
    q = jax.block_until_ready(dqn_forward(x, params))
    assert q.shape == (B, 32)

    q_ref_bf16 = reference_forward_bf16(x, w1, b1, w2, b2, w3, b3)
    assert jnp.allclose(q, q_ref_bf16, atol=2e-3, rtol=2e-3), "mismatch vs bf16 reference"
    q_ref_f32 = reference_forward_f32(x, w1, b1, w2, b2, w3, b3)
    assert jnp.allclose(q, q_ref_f32, atol=5e-2, rtol=5e-2), "mismatch vs f32 reference"

    # Medium batch (non-multiple of 8): single grid step, <=7 rows padded, row slice-back.
    B2 = 300
    key, kx2 = jax.random.split(key)
    x2 = jax.random.normal(kx2, (B2, NUMBER_OF_ARGUMENTS_PER_STATE), jnp.float32)
    q2 = jax.block_until_ready(dqn_forward(x2, params))
    assert q2.shape == (B2, 32)
    q2_ref = reference_forward_bf16(x2, w1, b1, w2, b2, w3, b3)
    assert jnp.allclose(q2, q2_ref, atol=2e-3, rtol=2e-3), "mismatch vs bf16 reference (B=300)"

    # Large batch: exercises the multi-step grid (>=4 steps for megacore) with bounded padding.
    B3 = 5000
    key, kx3 = jax.random.split(key)
    x3 = jax.random.normal(kx3, (B3, NUMBER_OF_ARGUMENTS_PER_STATE), jnp.float32)
    q3 = jax.block_until_ready(dqn_forward(x3, params))
    assert q3.shape == (B3, 32)
    q3_ref = reference_forward_bf16(x3, w1, b1, w2, b2, w3, b3)
    assert jnp.allclose(q3, q3_ref, atol=2e-3, rtol=2e-3), "mismatch vs bf16 reference (B=5000)"

    print("KERNEL_OK")
</pallas_src>

<mosaic_0001>
module attributes {stable_mosaic.version = 11 : i64} {
  func.func @_dqn_kernel(%arg0: i32, %arg1: memref<8x4xf32, #tpu.memory_space<vmem>>, %arg2: memref<4x128xbf16, #tpu.memory_space<vmem>>, %arg3: memref<1x128xf32, #tpu.memory_space<vmem>>, %arg4: memref<128x128xbf16, #tpu.memory_space<vmem>>, %arg5: memref<1x128xf32, #tpu.memory_space<vmem>>, %arg6: memref<128x32xbf16, #tpu.memory_space<vmem>>, %arg7: memref<1x32xf32, #tpu.memory_space<vmem>>, %arg8: memref<8x32xf32, #tpu.memory_space<vmem>>) attributes {dimension_semantics = [#tpu.dimension_semantics<parallel>], iteration_bounds = array<i64: 1>, scalar_prefetch = 0 : i64, scratch_operands = 0 : i64, tpu.core_type = #tpu.core_type<tc>, window_params = [{transform_indices = @transform_0, window_bounds = array<i64: 8, 4>}, {pipeline_mode = #tpu.pipeline_mode<synchronous>, transform_indices = @transform_1, window_bounds = array<i64: 4, 128>}, {pipeline_mode = #tpu.pipeline_mode<synchronous>, transform_indices = @transform_2, window_bounds = array<i64: 1, 128>}, {pipeline_mode = #tpu.pipeline_mode<synchronous>, transform_indices = @transform_3, window_bounds = array<i64: 128, 128>}, {pipeline_mode = #tpu.pipeline_mode<synchronous>, transform_indices = @transform_4, window_bounds = array<i64: 1, 128>}, {pipeline_mode = #tpu.pipeline_mode<synchronous>, transform_indices = @transform_5, window_bounds = array<i64: 128, 32>}, {pipeline_mode = #tpu.pipeline_mode<synchronous>, transform_indices = @transform_6, window_bounds = array<i64: 1, 32>}, {transform_indices = @transform_7, window_bounds = array<i64: 8, 32>}]} {
    %c0 = arith.constant 0 : index
    %c0_0 = arith.constant 0 : index
    %0 = vector.load %arg1[%c0, %c0_0] : memref<8x4xf32, #tpu.memory_space<vmem>>, vector<8x4xf32>
    %1 = arith.truncf %0 : vector<8x4xf32> to vector<8x4xbf16>
    %c0_1 = arith.constant 0 : index
    %c0_2 = arith.constant 0 : index
    %2 = vector.load %arg2[%c0_1, %c0_2] : memref<4x128xbf16, #tpu.memory_space<vmem>>, vector<4x128xbf16>
    %cst = arith.constant dense<0.000000e+00> : vector<8x128xf32>
    %3 = tpu.matmul %1, %2, %cst {dimension_numbers = #tpu.dot_dimension_numbers<[1], [0], [0], [1], [0, 0, 1, 1], [], []>} : vector<8x4xbf16>, vector<4x128xbf16>, vector<8x128xf32> -> vector<8x128xf32>
    %c0_3 = arith.constant 0 : index
    %c0_4 = arith.constant 0 : index
    %4 = vector.load %arg3[%c0_3, %c0_4] : memref<1x128xf32, #tpu.memory_space<vmem>>, vector<1x128xf32>
    %5 = vector.broadcast %4 : vector<1x128xf32> to vector<8x128xf32>
    %6 = arith.addf %3, %5 : vector<8x128xf32>
    %cst_5 = arith.constant 0.000000e+00 : f32
    %7 = vector.broadcast %cst_5 : f32 to vector<8x128xf32>
    %8 = arith.maximumf %6, %7 : vector<8x128xf32>
    %9 = arith.truncf %8 : vector<8x128xf32> to vector<8x128xbf16>
    %c0_6 = arith.constant 0 : index
    %c0_7 = arith.constant 0 : index
    %10 = vector.load %arg4[%c0_6, %c0_7] : memref<128x128xbf16, #tpu.memory_space<vmem>>, vector<128x128xbf16>
    %cst_8 = arith.constant dense<0.000000e+00> : vector<8x128xf32>
    %11 = tpu.matmul %9, %10, %cst_8 {dimension_numbers = #tpu.dot_dimension_numbers<[1], [0], [0], [1], [0, 0, 1, 1], [], []>} : vector<8x128xbf16>, vector<128x128xbf16>, vector<8x128xf32> -> vector<8x128xf32>
    %c0_9 = arith.constant 0 : index
    %c0_10 = arith.constant 0 : index
    %12 = vector.load %arg5[%c0_9, %c0_10] : memref<1x128xf32, #tpu.memory_space<vmem>>, vector<1x128xf32>
    %13 = vector.broadcast %12 : vector<1x128xf32> to vector<8x128xf32>
    %14 = arith.addf %11, %13 : vector<8x128xf32>
    %cst_11 = arith.constant 0.000000e+00 : f32
    %15 = vector.broadcast %cst_11 : f32 to vector<8x128xf32>
    %16 = arith.maximumf %14, %15 : vector<8x128xf32>
    %17 = arith.truncf %16 : vector<8x128xf32> to vector<8x128xbf16>
    %c0_12 = arith.constant 0 : index
    %c0_13 = arith.constant 0 : index
    %18 = vector.load %arg6[%c0_12, %c0_13] : memref<128x32xbf16, #tpu.memory_space<vmem>>, vector<128x32xbf16>
    %cst_14 = arith.constant dense<0.000000e+00> : vector<8x32xf32>
    %19 = tpu.matmul %17, %18, %cst_14 {dimension_numbers = #tpu.dot_dimension_numbers<[1], [0], [0], [1], [0, 0, 1, 1], [], []>} : vector<8x128xbf16>, vector<128x32xbf16>, vector<8x32xf32> -> vector<8x32xf32>
    %c0_15 = arith.constant 0 : index
    %c0_16 = arith.constant 0 : index
    %20 = vector.load %arg7[%c0_15, %c0_16] : memref<1x32xf32, #tpu.memory_space<vmem>>, vector<1x32xf32>
    %21 = vector.broadcast %20 : vector<1x32xf32> to vector<8x32xf32>
    %22 = arith.addf %19, %21 : vector<8x32xf32>
    %c0_17 = arith.constant 0 : index
    %c0_18 = arith.constant 0 : index
    %23 = vector.load %arg8[%c0_17, %c0_18] : memref<8x32xf32, #tpu.memory_space<vmem>>, vector<8x32xf32>
    tpu.vector_store %arg8[%c0_17, %c0_18], %22 {strides = array<i32>} : memref<8x32xf32, #tpu.memory_space<vmem>>, vector<8x32xf32>,
    return
  }
  func.func @transform_0(%arg0: i32) -> (i32, i32) {
    %c0_i32 = arith.constant 0 : i32
    %c0_i32_0 = arith.constant 0 : i32
    return %arg0, %c0_i32 : i32, i32
  }
  func.func @transform_1(%arg0: i32) -> (i32, i32) {
    %c0_i32 = arith.constant 0 : i32
    %c0_i32_0 = arith.constant 0 : i32
    %c0_i32_1 = arith.constant 0 : i32
    return %c0_i32, %c0_i32_0 : i32, i32
  }
  func.func @transform_2(%arg0: i32) -> (i32, i32) {
    %c0_i32 = arith.constant 0 : i32
    %c0_i32_0 = arith.constant 0 : i32
    %c0_i32_1 = arith.constant 0 : i32
    return %c0_i32, %c0_i32_0 : i32, i32
  }
  func.func @transform_3(%arg0: i32) -> (i32, i32) {
    %c0_i32 = arith.constant 0 : i32
    %c0_i32_0 = arith.constant 0 : i32
    %c0_i32_1 = arith.constant 0 : i32
    return %c0_i32, %c0_i32_0 : i32, i32
  }
  func.func @transform_4(%arg0: i32) -> (i32, i32) {
    %c0_i32 = arith.constant 0 : i32
    %c0_i32_0 = arith.constant 0 : i32
    %c0_i32_1 = arith.constant 0 : i32
    return %c0_i32, %c0_i32_0 : i32, i32
  }
  func.func @transform_5(%arg0: i32) -> (i32, i32) {
    %c0_i32 = arith.constant 0 : i32
    %c0_i32_0 = arith.constant 0 : i32
    %c0_i32_1 = arith.constant 0 : i32
    return %c0_i32, %c0_i32_0 : i32, i32
  }
  func.func @transform_6(%arg0: i32) -> (i32, i32) {
    %c0_i32 = arith.constant 0 : i32
    %c0_i32_0 = arith.constant 0 : i32
    %c0_i32_1 = arith.constant 0 : i32
    return %c0_i32, %c0_i32_0 : i32, i32
  }
  func.func @transform_7(%arg0: i32) -> (i32, i32) {
    %c0_i32 = arith.constant 0 : i32
    %c0_i32_0 = arith.constant 0 : i32
    return %arg0, %c0_i32 : i32, i32
  }
}

</mosaic_0001>

<bundles_post_ra>
// kernel: dqn_forward.1
= control target key start
LH: loop header
LB: loop body
LE: loop exit
PB: predicated region body
PF: predicated region fallthrough
CT: control target
= control target key end

     0   :  { %vm41_vm0 = vcmask 1041408   ;;  %v421_v0 = vmov 0.0   ;;  %vm422_vm1 = vmmov 0   ;;  %vm37_vm2 = vcmask 31744   ;;  %s552_s1 = inlined_call_operand.vmem [shape: bf16[4,128], index: 1, kind: input, shape index: {}]   ;;  %s553_s0 = inlined_call_operand.vmem [shape: f32[8,4], index: 0, kind: input, shape index: {}]   ;;  %s554_s3 = inlined_call_operand.vmem [shape: bf16[128,128], index: 3, kind: input, shape index: {}]   ;;  %s555_s5 = inlined_call_operand.vmem [shape: bf16[128,32], index: 5, kind: input, shape index: {}]   ;;  %s556_s2 = inlined_call_operand.vmem [shape: f32[1,128], index: 2, kind: input, shape index: {}]   ;;  %s557_s4 = inlined_call_operand.vmem [shape: f32[1,128], index: 4, kind: input, shape index: {}]   ;;  %s558_s6 = inlined_call_operand.vmem [shape: f32[1,32], index: 6, kind: input, shape index: {}]   ;;  %s559_s7 = inlined_call_operand.vmem [shape: f32[8,32], index: 7, kind: output, shape index: {}]  }
   0x1   :  { %357 = vmatprep.subr.bf16.mxu0 %v421_v0  ;;  %v29_v1 = vld [vmem:[%s552_s1] sm:$0x3]  ;;  %359 = vmatprep.mubr.msk.bf16.mxu0 %vm422_vm1, %v421_v0  ;;  %v405_v5 = vld [vmem:[%s554_s3 + $0x38] sm:$0xff]   ;;  %v406_v6 = vld [vmem:[%s554_s3 + $0x30] sm:$0xff]   ;;  %vm311_vm3 = vcmask 261120  }
   0x2   :  { %v27_v2 = vld [vmem:[%s553_s0] sm:$0xff]  ;;  %v43_v3 = vsel %vm41_vm0, %v29_v1, 0  ;;  %363 = vmatprep.subr.bf16.mxu1 %v421_v0  ;;  %379 = vmatprep.mubr.msk.bf16.mxu1 %vm422_vm1, %v421_v0  ;;  %v407_v7 = vld [vmem:[%s554_s3 + $0x28] sm:$0xff]   ;;  %v409_v9 = vld [vmem:[%s554_s3 + $0x18] sm:$0xff]  }
   0x3   :  { %v28_v4 = vpack.c.bf16 %v27_v2, %v27_v2  ;;  %358 = vmatpush3.bf16.msra.mxu0 %v43_v3  ;;  %364 = vmatpush3.bf16.msra.mxu1 %v405_v5  ;;  %v408_v8 = vld [vmem:[%s554_s3 + $0x20] sm:$0xff]   ;;  %v410_v10 = vld [vmem:[%s554_s3 + $0x10] sm:$0xff]   ;;  %v411_v11 = vld [vmem:[%s554_s3 + $0x8] sm:$0xff]  }
   0x4   :  { %383 = vmatprep.subr.bf16.mxu0 %v421_v0  ;;  %365 = vmatprep.subr.bf16.mxu1 %v421_v0  ;;  %v412_v12 = vld [vmem:[%s554_s3] sm:$0xff]   ;;  %v413_v13 = vld [vmem:[%s555_s5 + $0x38] sm:$0xff]   ;;  %v414_v14 = vld [vmem:[%s555_s5 + $0x30] sm:$0xff]  }
   0x5   :  { %v415_v15 = vld [vmem:[%s555_s5 + $0x28] sm:$0xff]   ;;  %v416_v16 = vld [vmem:[%s555_s5 + $0x20] sm:$0xff]   ;;  %v417_v17 = vld [vmem:[%s555_s5 + $0x18] sm:$0xff]  }
   0x6   :  { %360 = vmatmul.mubr.msk.bf16.vlgmr.msra.gmra.mxu0 %vm37_vm2, %v28_v4  ;;  %v418_v18 = vld [vmem:[%s555_s5 + $0x10] sm:$0xff]   ;;  %v317_v19 = vld [vmem:[%s556_s2] ss:$0 sm:$0xff]  ;;  %v419_v27 = vld [vmem:[%s555_s5 + $0x8] sm:$0xff]  }
   0x7   :  { %399 = vmatprep.mubr.msk.bf16.mxu0 %vm422_vm1, %v421_v0  ;;  %366 = vmatpush3.bf16.msra.mxu1 %v406_v6  ;;  %v420_v28 = vld [vmem:[%s555_s5] sm:$0xff]  }
   0x8   :  { %367 = vmatprep.subr.bf16.mxu1 %v421_v0  ;;  %384 = vmatpush3.bf16.msra.mxu0 %v413_v13  ;;  %v319_v29 = vld [vmem:[%s557_s4] ss:$0 sm:$0xff] }
   0x9   :  { %385 = vmatprep.subr.bf16.mxu0 %v421_v0  ;;  %v328_v37 = vld [vmem:[%s558_s6] ss:$0 sm:$0xff] }
   0xb   :  { %368 = vmatpush3.bf16.msra.mxu1 %v407_v7 }
   0xc   :  { %369 = vmatprep.subr.bf16.mxu1 %v421_v0  ;;  %386 = vmatpush3.bf16.msra.mxu0 %v414_v14 }
   0xd   :  { %387 = vmatprep.subr.bf16.mxu0 %v421_v0 }
   0xf   :  { %370 = vmatpush3.bf16.msra.mxu1 %v408_v8 }
  0x10   :  { %371 = vmatprep.subr.bf16.mxu1 %v421_v0  ;;  %388 = vmatpush3.bf16.msra.mxu0 %v415_v15 }
  0x11   :  { %389 = vmatprep.subr.bf16.mxu0 %v421_v0 }
  0x13   :  { %372 = vmatpush3.bf16.msra.mxu1 %v409_v9 }
  0x14   :  { %373 = vmatprep.subr.bf16.mxu1 %v421_v0  ;;  %390 = vmatpush3.bf16.msra.mxu0 %v416_v16 }
  0x15   :  { %391 = vmatprep.subr.bf16.mxu0 %v421_v0 }
  0x17   :  { %374 = vmatpush3.bf16.msra.mxu1 %v410_v10 }
  0x18   :  { %375 = vmatprep.subr.bf16.mxu1 %v421_v0  ;;  %392 = vmatpush3.bf16.msra.mxu0 %v417_v17 }
  0x19   :  { %393 = vmatprep.subr.bf16.mxu0 %v421_v0 }
  0x1b   :  { %376 = vmatpush3.bf16.msra.mxu1 %v411_v11 }
  0x1c   :  { %377 = vmatprep.subr.bf16.mxu1 %v421_v0  ;;  %394 = vmatpush3.bf16.msra.mxu0 %v418_v18 }
  0x1d   :  { %395 = vmatprep.subr.bf16.mxu0 %v421_v0 }
  0x1f   :  { %378 = vmatpush3.bf16.msra.mxu1 %v412_v12 }
  0x20   :  { %396 = vmatpush3.bf16.msra.mxu0 %v419_v27 }
  0x21   :  { %397 = vmatprep.subr.bf16.mxu0 %v421_v0 }
  0x24   :  { %398 = vmatpush3.bf16.msra.mxu0 %v420_v28 }
  0xc6   :  { %v79_v20 = vpop.f32.mrf.mxu0 }
  0xc7   :  { %v80_v21 = vadd.f32 %v317_v19, %v79_v20 }
  0xc8   :  { %v361_v22 = vpop.f32.mrf.mxu0 }
  0xc9   :  { %v85_v23 = vmax.f32 %v80_v21, 0.0 }
  0xca   :  { %v82_v24 = vpop.f32.mrf.mxu0 }
  0xcb   :  { %v86_v25 = vpack.c.bf16 %v85_v23, %v85_v23 }
  0xcc   :  { %v362_v26 = vpop.f32.mrf.mxu0 }
  0xcd   :  { %380 = vmatmul.mubr.bf16.vlgmr.msra.gmra.mxu1 %v86_v25 }
 0x18d   :  { %v192_v30 = vpop.f32.mrf.mxu1 }
 0x18e   :  { %v193_v31 = vadd.f32 %v319_v29, %v192_v30 }
 0x18f   :  { %v381_v32 = vpop.f32.mrf.mxu1 }
 0x190   :  { %v198_v33 = vmax.f32 %v193_v31, 0.0 }
 0x191   :  { %v195_v34 = vpop.f32.mrf.mxu1 }
 0x192   :  { %v199_v35 = vpack.c.bf16 %v198_v33, %v198_v33 }
 0x193   :  { %v382_v36 = vpop.f32.mrf.mxu1 }
 0x194   :  { %400 = vmatmul.mubr.bf16.vlgmr.msra.gmra.mxu0 %v199_v35 }
 0x254   :  { %v305_v38 = vpop.f32.mrf.mxu0 }
 0x255   :  { %v306_v39 = vadd.f32 %v328_v37, %v305_v38 }
 0x256   :  { %v401_v40 = vpop.f32.mrf.mxu0 }
 0x257   :  { %312 = vst.msk [vmem:[%s559_s7] sm:$0xff] %vm311_vm3, %v306_v39 }
 0x258   :  { %v308_v41 = vpop.f32.mrf.mxu0 }
 0x25a   :  { %v402_v42 = vpop.f32.mrf.mxu0 }

</bundles_post_ra>
